<compile_context>
chip_gen: v5e
topology: v5e:2x2
jax: 0.10.0
libtpu: 0.0.40
codegen_flags: <defaults>
</compile_context>

<pallas_src>
import math

import jax
import jax.numpy as jnp
from jax import lax
from jax.experimental import pallas as pl
from jax.experimental.pallas import tpu as pltpu

_LANE = 128
_SUBLANE = 8


def _round_up(n, m):
    return ((n + m - 1) // m) * m


def _gelu_exact(x):
    # Matches torch.nn.GELU() default (erf-based, not tanh approximation).
    # Kept in f32: v5e's VPU/EUP have no bf16 support; erf/exp go to the EUP slot.
    return 0.5 * x * (1.0 + lax.erf(x * (1.0 / math.sqrt(2.0))))


def ffnet_kernel(x_ref, w1_ref, b1_ref, w2_ref, b2_ref, w3_ref, b3_ref, o_ref):
    # Fused 3-layer MLP hot path, one batch tile per grid step.
    # x arrives f32 at its true feature width; cast to bf16 in-kernel (free VPU filler).
    x = x_ref[...].astype(jnp.bfloat16)
    h = jnp.dot(x, w1_ref[...], preferred_element_type=jnp.float32)
    h = _gelu_exact(h + b1_ref[...])
    h = jnp.dot(h.astype(jnp.bfloat16), w2_ref[...],
                preferred_element_type=jnp.float32)
    h = _gelu_exact(h + b2_ref[...])
    y = jnp.dot(h.astype(jnp.bfloat16), w3_ref[...],
                preferred_element_type=jnp.float32)
    o_ref[...] = (y + b3_ref[...]).astype(o_ref.dtype)


def _physical_vmem_cap_bytes():
    # Per-generation cap (v5e/v6e: 128 MiB, v7x: 64 MiB). Leave headroom for the compiler.
    try:
        cap = int(pltpu.get_tpu_info().vmem_capacity_bytes)
        return max(cap - (8 << 20), 16 << 20)
    except Exception:
        return 56 << 20  # safe on every current generation (v7x has 64 MiB physical)


def ffnet_forward(x, params, *, batch_tile=512):
    """x: (B, D_in) float32. params: dict of w1,b1,w2,b2,w3,b3 (weights stored (in, out))."""
    B, d_in = x.shape
    w1, b1 = params["w1"], params["b1"]
    w2, b2 = params["w2"], params["b2"]
    w3, b3 = params["w3"], params["b3"]
    h1, h2, d_out = w1.shape[1], w2.shape[1], w3.shape[1]

    # Hidden (intermediate) dims are lane-padded; input/output feature dims stay at their
    # true width (BlockSpec last dim == full array dim is legal) to minimize HBM traffic.
    h1_p = _round_up(h1, _LANE)
    h2_p = _round_up(h2, _LANE)

    # Batch tile: multiple of 8, up to `batch_tile` rows, but capped so a splittable batch
    # always produces >= 2 grid steps (so v7x's second TensorCore gets work).
    rows = _round_up(B, _SUBLANE)
    tb = min(batch_tile, rows)
    if rows > _SUBLANE:
        tb = min(tb, _round_up((B + 1) // 2, _SUBLANE))
    tb = max(_SUBLANE, _round_up(tb, _SUBLANE))
    b_p = _round_up(B, tb)
    grid = (b_p // tb,)

    def pad2(a, r, c):
        if a.shape == (r, c):
            return a
        return jnp.pad(a, ((0, r - a.shape[0]), (0, c - a.shape[1])))

    # x stays f32 and unpadded along features; only batch rows are padded (if needed).
    x_p = pad2(x, b_p, d_in)
    # bf16 matmul operands for the small, VMEM-resident weights; f32 biases.
    w1_p = pad2(w1, d_in, h1_p).astype(jnp.bfloat16)
    w2_p = pad2(w2, h1_p, h2_p).astype(jnp.bfloat16)
    w3_p = pad2(w3, h2_p, d_out).astype(jnp.bfloat16)
    b1_p = pad2(b1, 1, h1_p).astype(jnp.float32)
    b2_p = pad2(b2, 1, h2_p).astype(jnp.float32)
    b3_p = b3.astype(jnp.float32)

    x_spec = pl.BlockSpec((tb, d_in), lambda i: (i, 0))
    out_spec = pl.BlockSpec((tb, d_out), lambda i: (i, 0))

    def resident(shape, single_buffer):
        # Constant index_map -> fetched once, VMEM-resident across all batch tiles.
        if single_buffer:
            return pl.BlockSpec(shape, lambda i: (0, 0), pipeline_mode=pl.Buffered(1))
        return pl.BlockSpec(shape, lambda i: (0, 0))

    # VMEM budget (conservative: residents counted double-buffered even when Buffered(1)).
    bytes_needed = (
        2 * tb * d_in * 4                                      # x tile (f32, 2 bufs)
        + 2 * tb * d_out * 4                                   # out tile (f32, 2 bufs)
        + 2 * 2 * (d_in * h1_p + h1_p * h2_p + h2_p * d_out)   # bf16 weights
        + 2 * 4 * (h1_p + h2_p + d_out)                        # f32 biases
        + 6 * 4 * tb * max(h1_p, h2_p)                         # f32 + bf16 intermediates
    )
    vmem_limit = int(min(max(int(bytes_needed * 1.5) + (4 << 20), 32 << 20),
                         _physical_vmem_cap_bytes()))

    flops = 2 * b_p * (d_in * h1_p + h1_p * h2_p + h2_p * d_out)
    cost = pl.CostEstimate(
        flops=flops,
        transcendentals=b_p * (h1_p + h2_p),
        bytes_accessed=int(
            x_p.size * 4
            + (w1_p.size + w2_p.size + w3_p.size) * 2
            + (b1_p.size + b2_p.size + b3_p.size) * 4
            + b_p * d_out * 4
        ),
    )

    def run(single_buffer_residents):
        return pl.pallas_call(
            ffnet_kernel,
            out_shape=jax.ShapeDtypeStruct((b_p, d_out), jnp.float32),
            grid_spec=pl.GridSpec(
                grid=grid,
                in_specs=[
                    x_spec,
                    resident((d_in, h1_p), single_buffer_residents),
                    resident((1, h1_p), single_buffer_residents),
                    resident((h1_p, h2_p), single_buffer_residents),
                    resident((1, h2_p), single_buffer_residents),
                    resident((h2_p, d_out), single_buffer_residents),
                    resident((1, d_out), single_buffer_residents),
                ],
                out_specs=out_spec,
            ),
            compiler_params=pltpu.CompilerParams(
                dimension_semantics=("parallel",),  # batch tiles shard across v7x's 2 TCs
                vmem_limit_bytes=vmem_limit,
            ),
            cost_estimate=cost,
        )(x_p, w1_p, b1_p, w2_p, b2_p, w3_p, b3_p)

    try:
        out_p = run(True)
    except Exception:
        # Fallback for jax versions without BlockSpec(pipeline_mode=pl.Buffered(1)).
        out_p = run(False)

    return out_p[:B] if b_p != B else out_p


def init_ffnet_params(key, input_dim, output_dim, layer_sizes):
    """Deterministic init mimicking nn.Linear's uniform(-1/sqrt(fan_in), 1/sqrt(fan_in))."""
    dims = [input_dim] + list(layer_sizes) + [output_dim]
    params = {}
    for idx in range(len(dims) - 1):
        fan_in, fan_out = dims[idx], dims[idx + 1]
        key, kw, kb = jax.random.split(key, 3)
        bound = 1.0 / math.sqrt(fan_in)
        # stored as (in, out) == PyTorch weight.T
        params[f"w{idx + 1}"] = jax.random.uniform(
            kw, (fan_in, fan_out), jnp.float32, -bound, bound)
        params[f"b{idx + 1}"] = jax.random.uniform(
            kb, (1, fan_out), jnp.float32, -bound, bound)
    return params


def ffnet_reference(x, params, *, matmul_dtype=jnp.float32):
    # Plain-JAX reference. matmul_dtype=bf16 mirrors the kernel's operand quantization.
    def dense(a, w, b):
        return jnp.dot(a.astype(matmul_dtype), w.astype(matmul_dtype),
                       preferred_element_type=jnp.float32) + b

    h = jax.nn.gelu(dense(x, params["w1"], params["b1"]), approximate=False)
    h = jax.nn.gelu(dense(h, params["w2"], params["b2"]), approximate=False)
    return dense(h, params["w3"], params["b3"])


if __name__ == "__main__":
    # FFNet(input_dim=32, output_dim=16, layer_sizes=[64, 64], dropout_rate=0.1)
    # Dropout is identity at inference.
    D_IN, H1, H2, D_OUT = 32, 64, 64, 16

    key = jax.random.PRNGKey(0)
    key, kx_small, kx_large = jax.random.split(key, 3)
    params = init_ffnet_params(key, D_IN, D_OUT, [H1, H2])

    # B=8: matches the module's tiny example (single grid step); B=300: exercises the
    # multi-step parallel batch grid (tb=152, grid=(2,)) and the batch-row padding path.
    for B, kx in ((8, kx_small), (300, kx_large)):
        x = jax.random.normal(kx, (B, D_IN), dtype=jnp.float32)

        out = jax.block_until_ready(ffnet_forward(x, params))
        assert out.shape == (B, D_OUT), f"bad output shape {out.shape} at B={B}"

        ref_bf16 = ffnet_reference(x, params, matmul_dtype=jnp.bfloat16)
        ref_f32 = ffnet_reference(x, params, matmul_dtype=jnp.float32)
        assert jnp.allclose(out, ref_bf16, atol=5e-3, rtol=5e-3), (
            f"mismatch vs bf16-operand reference at B={B}")
        assert jnp.allclose(out, ref_f32, atol=5e-2, rtol=5e-2), (
            f"mismatch vs f32 reference at B={B}")

    print("KERNEL_OK")
</pallas_src>

<mosaic_0001>
module attributes {stable_mosaic.version = 11 : i64} {
  func.func @ffnet_kernel(%arg0: i32, %arg1: memref<8x32xf32, #tpu.memory_space<vmem>>, %arg2: memref<32x128xbf16, #tpu.memory_space<vmem>>, %arg3: memref<1x128xf32, #tpu.memory_space<vmem>>, %arg4: memref<128x128xbf16, #tpu.memory_space<vmem>>, %arg5: memref<1x128xf32, #tpu.memory_space<vmem>>, %arg6: memref<128x16xbf16, #tpu.memory_space<vmem>>, %arg7: memref<1x16xf32, #tpu.memory_space<vmem>>, %arg8: memref<8x16xf32, #tpu.memory_space<vmem>>) attributes {dimension_semantics = [#tpu.dimension_semantics<parallel>], iteration_bounds = array<i64: 1>, scalar_prefetch = 0 : i64, scratch_operands = 0 : i64, tpu.core_type = #tpu.core_type<tc>, window_params = [{transform_indices = @transform_0, window_bounds = array<i64: 8, 32>}, {pipeline_mode = #tpu.pipeline_mode<synchronous>, transform_indices = @transform_1, window_bounds = array<i64: 32, 128>}, {pipeline_mode = #tpu.pipeline_mode<synchronous>, transform_indices = @transform_2, window_bounds = array<i64: 1, 128>}, {pipeline_mode = #tpu.pipeline_mode<synchronous>, transform_indices = @transform_3, window_bounds = array<i64: 128, 128>}, {pipeline_mode = #tpu.pipeline_mode<synchronous>, transform_indices = @transform_4, window_bounds = array<i64: 1, 128>}, {pipeline_mode = #tpu.pipeline_mode<synchronous>, transform_indices = @transform_5, window_bounds = array<i64: 128, 16>}, {pipeline_mode = #tpu.pipeline_mode<synchronous>, transform_indices = @transform_6, window_bounds = array<i64: 1, 16>}, {transform_indices = @transform_7, window_bounds = array<i64: 8, 16>}]} {
    %c0 = arith.constant 0 : index
    %c0_0 = arith.constant 0 : index
    %0 = vector.load %arg1[%c0, %c0_0] : memref<8x32xf32, #tpu.memory_space<vmem>>, vector<8x32xf32>
    %1 = arith.truncf %0 : vector<8x32xf32> to vector<8x32xbf16>
    %c0_1 = arith.constant 0 : index
    %c0_2 = arith.constant 0 : index
    %2 = vector.load %arg2[%c0_1, %c0_2] : memref<32x128xbf16, #tpu.memory_space<vmem>>, vector<32x128xbf16>
    %cst = arith.constant dense<0.000000e+00> : vector<8x128xf32>
    %3 = tpu.matmul %1, %2, %cst {dimension_numbers = #tpu.dot_dimension_numbers<[1], [0], [0], [1], [0, 0, 1, 1], [], []>} : vector<8x32xbf16>, vector<32x128xbf16>, vector<8x128xf32> -> vector<8x128xf32>
    %c0_3 = arith.constant 0 : index
    %c0_4 = arith.constant 0 : index
    %4 = vector.load %arg3[%c0_3, %c0_4] : memref<1x128xf32, #tpu.memory_space<vmem>>, vector<1x128xf32>
    %5 = vector.broadcast %4 : vector<1x128xf32> to vector<8x128xf32>
    %6 = arith.addf %3, %5 : vector<8x128xf32>
    %cst_5 = arith.constant 5.000000e-01 : f32
    %7 = vector.broadcast %cst_5 : f32 to vector<8x128xf32>
    %8 = arith.mulf %7, %6 : vector<8x128xf32>
    %cst_6 = arith.constant 0.707106769 : f32
    %9 = vector.broadcast %cst_6 : f32 to vector<8x128xf32>
    %10 = arith.mulf %6, %9 : vector<8x128xf32>
    %11 = math.erf %10 : vector<8x128xf32>
    %cst_7 = arith.constant 1.000000e+00 : f32
    %12 = vector.broadcast %cst_7 : f32 to vector<8x128xf32>
    %13 = arith.addf %12, %11 : vector<8x128xf32>
    %14 = arith.mulf %8, %13 : vector<8x128xf32>
    %15 = arith.truncf %14 : vector<8x128xf32> to vector<8x128xbf16>
    %c0_8 = arith.constant 0 : index
    %c0_9 = arith.constant 0 : index
    %16 = vector.load %arg4[%c0_8, %c0_9] : memref<128x128xbf16, #tpu.memory_space<vmem>>, vector<128x128xbf16>
    %cst_10 = arith.constant dense<0.000000e+00> : vector<8x128xf32>
    %17 = tpu.matmul %15, %16, %cst_10 {dimension_numbers = #tpu.dot_dimension_numbers<[1], [0], [0], [1], [0, 0, 1, 1], [], []>} : vector<8x128xbf16>, vector<128x128xbf16>, vector<8x128xf32> -> vector<8x128xf32>
    %c0_11 = arith.constant 0 : index
    %c0_12 = arith.constant 0 : index
    %18 = vector.load %arg5[%c0_11, %c0_12] : memref<1x128xf32, #tpu.memory_space<vmem>>, vector<1x128xf32>
    %19 = vector.broadcast %18 : vector<1x128xf32> to vector<8x128xf32>
    %20 = arith.addf %17, %19 : vector<8x128xf32>
    %cst_13 = arith.constant 5.000000e-01 : f32
    %21 = vector.broadcast %cst_13 : f32 to vector<8x128xf32>
    %22 = arith.mulf %21, %20 : vector<8x128xf32>
    %cst_14 = arith.constant 0.707106769 : f32
    %23 = vector.broadcast %cst_14 : f32 to vector<8x128xf32>
    %24 = arith.mulf %20, %23 : vector<8x128xf32>
    %25 = math.erf %24 : vector<8x128xf32>
    %cst_15 = arith.constant 1.000000e+00 : f32
    %26 = vector.broadcast %cst_15 : f32 to vector<8x128xf32>
    %27 = arith.addf %26, %25 : vector<8x128xf32>
    %28 = arith.mulf %22, %27 : vector<8x128xf32>
    %29 = arith.truncf %28 : vector<8x128xf32> to vector<8x128xbf16>
    %c0_16 = arith.constant 0 : index
    %c0_17 = arith.constant 0 : index
    %30 = vector.load %arg6[%c0_16, %c0_17] : memref<128x16xbf16, #tpu.memory_space<vmem>>, vector<128x16xbf16>
    %cst_18 = arith.constant dense<0.000000e+00> : vector<8x16xf32>
    %31 = tpu.matmul %29, %30, %cst_18 {dimension_numbers = #tpu.dot_dimension_numbers<[1], [0], [0], [1], [0, 0, 1, 1], [], []>} : vector<8x128xbf16>, vector<128x16xbf16>, vector<8x16xf32> -> vector<8x16xf32>
    %c0_19 = arith.constant 0 : index
    %c0_20 = arith.constant 0 : index
    %32 = vector.load %arg7[%c0_19, %c0_20] : memref<1x16xf32, #tpu.memory_space<vmem>>, vector<1x16xf32>
    %33 = vector.broadcast %32 : vector<1x16xf32> to vector<8x16xf32>
    %34 = arith.addf %31, %33 : vector<8x16xf32>
    %c0_21 = arith.constant 0 : index
    %c0_22 = arith.constant 0 : index
    %35 = vector.load %arg8[%c0_21, %c0_22] : memref<8x16xf32, #tpu.memory_space<vmem>>, vector<8x16xf32>
    tpu.vector_store %arg8[%c0_21, %c0_22], %34 {strides = array<i32>} : memref<8x16xf32, #tpu.memory_space<vmem>>, vector<8x16xf32>,
    return
  }
  func.func @transform_0(%arg0: i32) -> (i32, i32) {
    %c0_i32 = arith.constant 0 : i32
    %c0_i32_0 = arith.constant 0 : i32
    return %arg0, %c0_i32 : i32, i32
  }
  func.func @transform_1(%arg0: i32) -> (i32, i32) {
    %c0_i32 = arith.constant 0 : i32
    %c0_i32_0 = arith.constant 0 : i32
    %c0_i32_1 = arith.constant 0 : i32
    return %c0_i32, %c0_i32_0 : i32, i32
  }
  func.func @transform_2(%arg0: i32) -> (i32, i32) {
    %c0_i32 = arith.constant 0 : i32
    %c0_i32_0 = arith.constant 0 : i32
    %c0_i32_1 = arith.constant 0 : i32
    return %c0_i32, %c0_i32_0 : i32, i32
  }
  func.func @transform_3(%arg0: i32) -> (i32, i32) {
    %c0_i32 = arith.constant 0 : i32
    %c0_i32_0 = arith.constant 0 : i32
    %c0_i32_1 = arith.constant 0 : i32
    return %c0_i32, %c0_i32_0 : i32, i32
  }
  func.func @transform_4(%arg0: i32) -> (i32, i32) {
    %c0_i32 = arith.constant 0 : i32
    %c0_i32_0 = arith.constant 0 : i32
    %c0_i32_1 = arith.constant 0 : i32
    return %c0_i32, %c0_i32_0 : i32, i32
  }
  func.func @transform_5(%arg0: i32) -> (i32, i32) {
    %c0_i32 = arith.constant 0 : i32
    %c0_i32_0 = arith.constant 0 : i32
    %c0_i32_1 = arith.constant 0 : i32
    return %c0_i32, %c0_i32_0 : i32, i32
  }
  func.func @transform_6(%arg0: i32) -> (i32, i32) {
    %c0_i32 = arith.constant 0 : i32
    %c0_i32_0 = arith.constant 0 : i32
    %c0_i32_1 = arith.constant 0 : i32
    return %c0_i32, %c0_i32_0 : i32, i32
  }
  func.func @transform_7(%arg0: i32) -> (i32, i32) {
    %c0_i32 = arith.constant 0 : i32
    %c0_i32_0 = arith.constant 0 : i32
    return %arg0, %c0_i32 : i32, i32
  }
}

module attributes {stable_mosaic.version = 11 : i64} {
  func.func @ffnet_kernel(%arg0: i32, %arg1: memref<8x32xf32, #tpu.memory_space<vmem>>, %arg2: memref<32x128xbf16, #tpu.memory_space<vmem>>, %arg3: memref<1x128xf32, #tpu.memory_space<vmem>>, %arg4: memref<128x128xbf16, #tpu.memory_space<vmem>>, %arg5: memref<1x128xf32, #tpu.memory_space<vmem>>, %arg6: memref<128x16xbf16, #tpu.memory_space<vmem>>, %arg7: memref<1x16xf32, #tpu.memory_space<vmem>>, %arg8: memref<8x16xf32, #tpu.memory_space<vmem>>) attributes {dimension_semantics = [#tpu.dimension_semantics<parallel>], iteration_bounds = array<i64: 1>, scalar_prefetch = 0 : i64, scratch_operands = 0 : i64, tpu.core_type = #tpu.core_type<tc>, window_params = [{transform_indices = @transform_0, window_bounds = array<i64: 8, 32>}, {pipeline_mode = #tpu.pipeline_mode<synchronous>, transform_indices = @transform_1, window_bounds = array<i64: 32, 128>}, {pipeline_mode = #tpu.pipeline_mode<synchronous>, transform_indices = @transform_2, window_bounds = array<i64: 1, 128>}, {pipeline_mode = #tpu.pipeline_mode<synchronous>, transform_indices = @transform_3, window_bounds = array<i64: 128, 128>}, {pipeline_mode = #tpu.pipeline_mode<synchronous>, transform_indices = @transform_4, window_bounds = array<i64: 1, 128>}, {pipeline_mode = #tpu.pipeline_mode<synchronous>, transform_indices = @transform_5, window_bounds = array<i64: 128, 16>}, {pipeline_mode = #tpu.pipeline_mode<synchronous>, transform_indices = @transform_6, window_bounds = array<i64: 1, 16>}, {transform_indices = @transform_7, window_bounds = array<i64: 8, 16>}]} {
    %c0 = arith.constant 0 : index
    %c0_0 = arith.constant 0 : index
    %0 = vector.load %arg1[%c0, %c0_0] : memref<8x32xf32, #tpu.memory_space<vmem>>, vector<8x32xf32>
    %1 = arith.truncf %0 : vector<8x32xf32> to vector<8x32xbf16>
    %c0_1 = arith.constant 0 : index
    %c0_2 = arith.constant 0 : index
    %2 = vector.load %arg2[%c0_1, %c0_2] : memref<32x128xbf16, #tpu.memory_space<vmem>>, vector<32x128xbf16>
    %cst = arith.constant dense<0.000000e+00> : vector<8x128xf32>
    %3 = tpu.matmul %1, %2, %cst {dimension_numbers = #tpu.dot_dimension_numbers<[1], [0], [0], [1], [0, 0, 1, 1], [], []>} : vector<8x32xbf16>, vector<32x128xbf16>, vector<8x128xf32> -> vector<8x128xf32>
    %c0_3 = arith.constant 0 : index
    %c0_4 = arith.constant 0 : index
    %4 = vector.load %arg3[%c0_3, %c0_4] : memref<1x128xf32, #tpu.memory_space<vmem>>, vector<1x128xf32>
    %5 = vector.broadcast %4 : vector<1x128xf32> to vector<8x128xf32>
    %6 = arith.addf %3, %5 : vector<8x128xf32>
    %cst_5 = arith.constant 5.000000e-01 : f32
    %7 = vector.broadcast %cst_5 : f32 to vector<8x128xf32>
    %8 = arith.mulf %7, %6 : vector<8x128xf32>
    %cst_6 = arith.constant 0.707106769 : f32
    %9 = vector.broadcast %cst_6 : f32 to vector<8x128xf32>
    %10 = arith.mulf %6, %9 : vector<8x128xf32>
    %11 = math.erf %10 : vector<8x128xf32>
    %cst_7 = arith.constant 1.000000e+00 : f32
    %12 = vector.broadcast %cst_7 : f32 to vector<8x128xf32>
    %13 = arith.addf %12, %11 : vector<8x128xf32>
    %14 = arith.mulf %8, %13 : vector<8x128xf32>
    %15 = arith.truncf %14 : vector<8x128xf32> to vector<8x128xbf16>
    %c0_8 = arith.constant 0 : index
    %c0_9 = arith.constant 0 : index
    %16 = vector.load %arg4[%c0_8, %c0_9] : memref<128x128xbf16, #tpu.memory_space<vmem>>, vector<128x128xbf16>
    %cst_10 = arith.constant dense<0.000000e+00> : vector<8x128xf32>
    %17 = tpu.matmul %15, %16, %cst_10 {dimension_numbers = #tpu.dot_dimension_numbers<[1], [0], [0], [1], [0, 0, 1, 1], [], []>} : vector<8x128xbf16>, vector<128x128xbf16>, vector<8x128xf32> -> vector<8x128xf32>
    %c0_11 = arith.constant 0 : index
    %c0_12 = arith.constant 0 : index
    %18 = vector.load %arg5[%c0_11, %c0_12] : memref<1x128xf32, #tpu.memory_space<vmem>>, vector<1x128xf32>
    %19 = vector.broadcast %18 : vector<1x128xf32> to vector<8x128xf32>
    %20 = arith.addf %17, %19 : vector<8x128xf32>
    %cst_13 = arith.constant 5.000000e-01 : f32
    %21 = vector.broadcast %cst_13 : f32 to vector<8x128xf32>
    %22 = arith.mulf %21, %20 : vector<8x128xf32>
    %cst_14 = arith.constant 0.707106769 : f32
    %23 = vector.broadcast %cst_14 : f32 to vector<8x128xf32>
    %24 = arith.mulf %20, %23 : vector<8x128xf32>
    %25 = math.erf %24 : vector<8x128xf32>
    %cst_15 = arith.constant 1.000000e+00 : f32
    %26 = vector.broadcast %cst_15 : f32 to vector<8x128xf32>
    %27 = arith.addf %26, %25 : vector<8x128xf32>
    %28 = arith.mulf %22, %27 : vector<8x128xf32>
    %29 = arith.truncf %28 : vector<8x128xf32> to vector<8x128xbf16>
    %c0_16 = arith.constant 0 : index
    %c0_17 = arith.constant 0 : index
    %30 = vector.load %arg6[%c0_16, %c0_17] : memref<128x16xbf16, #tpu.memory_space<vmem>>, vector<128x16xbf16>
    %cst_18 = arith.constant dense<0.000000e+00> : vector<8x16xf32>
    %31 = tpu.matmul %29, %30, %cst_18 {dimension_numbers = #tpu.dot_dimension_numbers<[1], [0], [0], [1], [0, 0, 1, 1], [], []>} : vector<8x128xbf16>, vector<128x16xbf16>, vector<8x16xf32> -> vector<8x16xf32>
    %c0_19 = arith.constant 0 : index
    %c0_20 = arith.constant 0 : index
    %32 = vector.load %arg7[%c0_19, %c0_20] : memref<1x16xf32, #tpu.memory_space<vmem>>, vector<1x16xf32>
    %33 = vector.broadcast %32 : vector<1x16xf32> to vector<8x16xf32>
    %34 = arith.addf %31, %33 : vector<8x16xf32>
    %c0_21 = arith.constant 0 : index
    %c0_22 = arith.constant 0 : index
    %35 = vector.load %arg8[%c0_21, %c0_22] : memref<8x16xf32, #tpu.memory_space<vmem>>, vector<8x16xf32>
    tpu.vector_store %arg8[%c0_21, %c0_22], %34 {strides = array<i32>} : memref<8x16xf32, #tpu.memory_space<vmem>>, vector<8x16xf32>,
    return
  }
  func.func @transform_0(%arg0: i32) -> (i32, i32) {
    %c0_i32 = arith.constant 0 : i32
    %c0_i32_0 = arith.constant 0 : i32
    return %arg0, %c0_i32 : i32, i32
  }
  func.func @transform_1(%arg0: i32) -> (i32, i32) {
    %c0_i32 = arith.constant 0 : i32
    %c0_i32_0 = arith.constant 0 : i32
    %c0_i32_1 = arith.constant 0 : i32
    return %c0_i32, %c0_i32_0 : i32, i32
  }
  func.func @transform_2(%arg0: i32) -> (i32, i32) {
    %c0_i32 = arith.constant 0 : i32
    %c0_i32_0 = arith.constant 0 : i32
    %c0_i32_1 = arith.constant 0 : i32
    return %c0_i32, %c0_i32_0 : i32, i32
  }
  func.func @transform_3(%arg0: i32) -> (i32, i32) {
    %c0_i32 = arith.constant 0 : i32
    %c0_i32_0 = arith.constant 0 : i32
    %c0_i32_1 = arith.constant 0 : i32
    return %c0_i32, %c0_i32_0 : i32, i32
  }
  func.func @transform_4(%arg0: i32) -> (i32, i32) {
    %c0_i32 = arith.constant 0 : i32
    %c0_i32_0 = arith.constant 0 : i32
    %c0_i32_1 = arith.constant 0 : i32
    return %c0_i32, %c0_i32_0 : i32, i32
  }
  func.func @transform_5(%arg0: i32) -> (i32, i32) {
    %c0_i32 = arith.constant 0 : i32
    %c0_i32_0 = arith.constant 0 : i32
    %c0_i32_1 = arith.constant 0 : i32
    return %c0_i32, %c0_i32_0 : i32, i32
  }
  func.func @transform_6(%arg0: i32) -> (i32, i32) {
    %c0_i32 = arith.constant 0 : i32
    %c0_i32_0 = arith.constant 0 : i32
    %c0_i32_1 = arith.constant 0 : i32
    return %c0_i32, %c0_i32_0 : i32, i32
  }
  func.func @transform_7(%arg0: i32) -> (i32, i32) {
    %c0_i32 = arith.constant 0 : i32
    %c0_i32_0 = arith.constant 0 : i32
    return %arg0, %c0_i32 : i32, i32
  }
}

</mosaic_0001>

<bundles_post_ra>
// kernel: tpu_custom_call.1
= control target key start
LH: loop header
LB: loop body
LE: loop exit
PB: predicated region body
PF: predicated region fallthrough
CT: control target
= control target key end

     0   :  { %12 = vsyncpa [#allocation3], 0  ;;  %s620_s0 = inlined_call_operand.vmem [shape: f32[8,32], index: 0, kind: input, shape index: {}]   ;;  %s621_s1 = inlined_call_operand.hbm [shape: bf16[32,128], index: 1, kind: input, shape index: {}]   ;;  %s622_s2 = inlined_call_operand.vmem [shape: f32[1,128], index: 2, kind: input, shape index: {}]   ;;  %s623_s3 = inlined_call_operand.vmem [shape: bf16[128,128], index: 3, kind: input, shape index: {}]   ;;  %s624_s4 = inlined_call_operand.vmem [shape: f32[1,128], index: 4, kind: input, shape index: {}]   ;;  %s625_s5 = inlined_call_operand.vmem [shape: bf16[128,16], index: 5, kind: input, shape index: {}]   ;;  %s626_s6 = inlined_call_operand.vmem [shape: f32[1,16], index: 6, kind: input, shape index: {}]   ;;  %s627_s7 = inlined_call_operand.hbm [shape: f32[8,16], index: 7, kind: output, shape index: {}]  }
   0x1   :  { %13 = vsyncpa [#allocation4], 0  ;;  %s20_s26 = sshll.u32 %s621_s1, 4  ;;  %s510_s27 = smov [#allocation2]   ;;  %s21_s26 = int_to_ptr.hbm [resolvable:$true] %s20_s26 }
   0x2   :  { %s22_s28 = sshll.u32 %s510_s27, 4  ;;  %s511_s29 = smov 64   ;;  %s23_s28 = int_to_ptr.vmem [resolvable:$true] %s22_s28 }
   0x3   :  { %s512_s30 = smov 4  }
   0x4   :  { %28 = dma.hbm_to_vmem [thread:$0]  %s21_s26, 256, %s23_s28, [#allocation3], %s511_s29, %s511_s29, %s512_s30  }
   0x5   :  { %506 = dma.done.wait [#allocation3], 256  }
   0x6   :  { %507 = vsyncadd [#allocation3], 4294967040  ;;  %v430_v0 = vld [vmem:[#allocation2 + $0x8] sm:$0xff]  ;;  %v429_v1 = vld [vmem:[#allocation2] sm:$0xff]  ;;  %vm66_vm0 = vcmask 261120   ;;  %s513_s17 = smov [#allocation5]  }
   0x7   :  { %76 = vmatpush.bf16.msra.mxu0 %v430_v0  ;;  %v44_v2 = vld [vmem:[%s620_s0] sm:$0xff]  ;;  %v438_v4 = vld [vmem:[%s623_s3 + $0x38] sm:$0xff]  ;;  %v437_v5 = vld [vmem:[%s623_s3 + $0x30] sm:$0xff]  ;;  %s342_s18 = sshll.u32 %s513_s17, 4  ;;  %s344_s20 = sshll.u32 %s627_s7, 4  ;;  %vm335_vm9 = vcmask 130048   ;;  %s343_s18 = int_to_ptr.vmem [resolvable:$true] %s342_s18  ;;  %s345_s20 = int_to_ptr.hbm [resolvable:$true] %s344_s20 }
   0x8   :  { %v45_v3 = vpack.c.bf16 %v44_v2, %v44_v2  ;;  %196 = vmatpush.bf16.msra.mxu1 %v438_v4  ;;  %v451_v6 = vld [vmem:[%s622_s2] ss:$0 sm:$0xff]  ;;  %v436_v7 = vld [vmem:[%s623_s3 + $0x28] sm:$0xff]  ;;  %v434_v13 = vld [vmem:[%s623_s3 + $0x18] sm:$0xff] }
   0x9   :  { %v435_v10 = vld [vmem:[%s623_s3 + $0x20] sm:$0xff]  ;;  %v433_v17 = vld [vmem:[%s623_s3 + $0x10] sm:$0xff]  ;;  %v432_v22 = vld [vmem:[%s623_s3 + $0x8] sm:$0xff] }
   0xa   :  { %v431_v26 = vld [vmem:[%s623_s3] sm:$0xff]  ;;  %v446_v56 = vld [vmem:[%s625_s5 + $0x38] sm:$0xff]  ;;  %v445_v57 = vld [vmem:[%s625_s5 + $0x30] sm:$0xff] }
   0xb   :  { %77 = vmatpush.bf16.msra.mxu0 %v429_v1  ;;  %322 = vmatpush.bf16.msra.mxu2 %v446_v56  ;;  %v452_v58 = vld [vmem:[%s624_s4] ss:$0 sm:$0xff]  ;;  %v444_v59 = vld [vmem:[%s625_s5 + $0x28] sm:$0xff]  ;;  %v442_v1 = vld [vmem:[%s625_s5 + $0x18] sm:$0xff] }
   0xc   :  { %197 = vmatpush.bf16.msra.mxu1 %v437_v5  ;;  %v443_v62 = vld [vmem:[%s625_s5 + $0x20] sm:$0xff] }
   0xe   :  { %362 = vmatmul.msk.bf16.vlgmr.msra.gmra.mxu0 %vm66_vm0, %v45_v3 }
   0xf   :  { %323 = vmatpush.bf16.msra.mxu2 %v445_v57 }
  0x10   :  { %198 = vmatpush.bf16.msra.mxu1 %v436_v7 }
  0x13   :  { %324 = vmatpush.bf16.msra.mxu2 %v444_v59 }
  0x14   :  { %199 = vmatpush.bf16.msra.mxu1 %v435_v10 }
  0x17   :  { %325 = vmatpush.bf16.msra.mxu2 %v443_v62 }
  0x18   :  { %200 = vmatpush.bf16.msra.mxu1 %v434_v13 }
  0x1b   :  { %326 = vmatpush.bf16.msra.mxu2 %v442_v1 }
  0x1c   :  { %201 = vmatpush.bf16.msra.mxu1 %v433_v17 }
  0x20   :  { %202 = vmatpush.bf16.msra.mxu1 %v432_v22 }
  0x24   :  { %203 = vmatpush.bf16.msra.mxu1 %v431_v26 }
  0x8b   :  { %v79_v8 = vpop.f32.mrf.mxu0 }
  0x8c   :  { %v80_v9 = vadd.f32 %v451_v6, %v79_v8  ;;  %v441_v6 = vld [vmem:[%s625_s5 + $0x10] sm:$0xff] }
  0x8d   :  { %327 = vmatpush.bf16.msra.mxu2 %v441_v6 }
  0x8e   :  { %v84_v11 = vmul.f32 0.70710677, %v80_v9  ;;  %v83_v52 = vmul.f32 0.5, %v80_v9 }
  0x90   :  { %v85_v12 = vmul.f32 %v84_v11, %v84_v11 }
  0x92   :  { %v86_v14 = vmin.f32 %v85_v12, 16.0 }
  0x93   :  { %v81_v15 = vpop.f32.mrf.mxu0 }
  0x94   :  { %v87_v16 = vmul.f32 2.1237322e-06, %v86_v14  ;;  %v98_v18 = vmul.f32 3.8918573e-05, %v86_v14  ;;  %v439_v15 = vld [vmem:[%s625_s5] sm:$0xff] }
  0x96   :  { %v88_v19 = vadd.f32 0.00028619796, %v87_v16  ;;  %v99_v20 = vadd.f32 0.001143296, %v98_v18 }
  0x98   :  { %v89_v21 = vmul.f32 %v88_v19, %v86_v14  ;;  %v100_v23 = vmul.f32 %v99_v20, %v86_v14 }
  0x9a   :  { %v101_v24 = vadd.f32 0.014752088, %v100_v23  ;;  %v90_v25 = vadd.f32 0.0036580483, %v89_v21 }
  0x9c   :  { %v102_v27 = vmul.f32 %v101_v24, %v86_v14  ;;  %v91_v29 = vmul.f32 %v90_v25, %v86_v14 }
  0x9e   :  { %v103_v28 = vadd.f32 0.112945676, %v102_v27  ;;  %v92_v32 = vadd.f32 0.05243302, %v91_v29 }
  0xa0   :  { %v104_v30 = vmul.f32 %v103_v28, %v86_v14  ;;  %v93_v35 = vmul.f32 %v92_v32, %v86_v14 }
  0xa2   :  { %v105_v31 = vadd.f32 0.4994258, %v104_v30  ;;  %v94_v36 = vadd.f32 0.18741608, %v93_v35 }
  0xa4   :  { %v106_v33 = vmul.f32 %v105_v31, %v86_v14  ;;  %v95_v38 = vmul.f32 %v94_v36, %v86_v14 }
  0xa6   :  { %v107_v34 = vadd.f32 1.0, %v106_v33  ;;  %v96_v42 = vadd.f32 1.1283791, %v95_v38 }
  0xa8   :  { %454 = vrcp.f32 %v107_v34  ;;  %v119_v41 = vand.u32 2147483648, %v107_v34  ;;  %v117_v44 = vand.u32 2147483647, %v107_v34  ;;  %vm113_vm2 = vweird.f32 %v107_v34 }
  0xa9   :  { %v97_v47 = vmul.f32 %v96_v42, %v84_v11  ;;  %v440_v11 = vld [vmem:[%s625_s5 + $0x8] sm:$0xff] }
  0xaa   :  { %v120_v46 = vor.u32 1.1754944e-38, %v119_v41  ;;  %vm118_vm4 = vcmp.eq.f32.partialorder %v117_v44, 8.507059e+37  ;;  %328 = vmatpush.bf16.msra.mxu2 %v440_v11  ;;  %v453_v44 = vld [vmem:[%s626_s6] ss:$0 sm:$0xff] }
  0xae   :  { %v455_v37 = vpop.eup %454  ;;  %329 = vmatpush.bf16.msra.mxu2 %v439_v15 }
  0xaf   :  { %v109_v39 = vmul.f32 %v455_v37, %v107_v34  ;;  %vm114_vm1 = vweird.f32 %v455_v37 }
  0xb0   :  { %vm115_vm3 = vmor %vm113_vm2, %vm114_vm1 }
  0xb1   :  { %v110_v40 = vsub.f32 1.0, %v109_v39 }
  0xb3   :  { %v111_v43 = vmul.f32 %v455_v37, %v110_v40 }
  0xb5   :  { %v112_v45 = vadd.f32 %v455_v37, %v111_v43 }
  0xb7   :  { %v116_v48 = vsel %vm115_vm3, %v455_v37, %v112_v45 }
  0xb8   :  { %v121_v49 = vsel %vm118_vm4, %v120_v46, %v116_v48 }
  0xb9   :  { %v122_v50 = vmul.f32 %v121_v49, %v97_v47 }
  0xbb   :  { %v363_v51 = vclamps-f32 %v122_v50, 1.0 }
  0xbd   :  { %v125_v53 = vadd.f32 1.0, %v363_v51 }
  0xbf   :  { %v126_v54 = vmul.f32 %v125_v53, %v83_v52 }
  0xc1   :  { %v127_v55 = vpack.c.bf16 %v126_v54, %v126_v54 }
  0xc3   :  { %204 = vmatmul.bf16.vlgmr.msra.gmra.mxu1 %v127_v55 }
 0x140   :  { %v205_v60 = vpop.f32.mrf.mxu1 }
 0x141   :  { %v206_v61 = vadd.f32 %v452_v58, %v205_v60 }
 0x143   :  { %v210_v63 = vmul.f32 0.70710677, %v206_v61  ;;  %v209_v40 = vmul.f32 0.5, %v206_v61 }
 0x145   :  { %v211_v0 = vmul.f32 %v210_v63, %v210_v63 }
 0x147   :  { %v212_v2 = vmin.f32 %v211_v0, 16.0 }
 0x148   :  { %v207_v3 = vpop.f32.mrf.mxu1 }
 0x149   :  { %v213_v4 = vmul.f32 2.1237322e-06, %v212_v2  ;;  %v224_v5 = vmul.f32 3.8918573e-05, %v212_v2 }
 0x14b   :  { %v214_v7 = vadd.f32 0.00028619796, %v213_v4  ;;  %v225_v8 = vadd.f32 0.001143296, %v224_v5 }
 0x14d   :  { %v215_v9 = vmul.f32 %v214_v7, %v212_v2  ;;  %v226_v10 = vmul.f32 %v225_v8, %v212_v2 }
 0x14f   :  { %v227_v12 = vadd.f32 0.014752088, %v226_v10  ;;  %v216_v13 = vadd.f32 0.0036580483, %v215_v9 }
 0x151   :  { %v228_v14 = vmul.f32 %v227_v12, %v212_v2  ;;  %v217_v17 = vmul.f32 %v216_v13, %v212_v2 }
 0x153   :  { %v229_v16 = vadd.f32 0.112945676, %v228_v14  ;;  %v218_v20 = vadd.f32 0.05243302, %v217_v17 }
 0x155   :  { %v230_v18 = vmul.f32 %v229_v16, %v212_v2  ;;  %v219_v23 = vmul.f32 %v218_v20, %v212_v2 }
 0x157   :  { %v231_v19 = vadd.f32 0.4994258, %v230_v18  ;;  %v220_v24 = vadd.f32 0.18741608, %v219_v23 }
 0x159   :  { %v232_v21 = vmul.f32 %v231_v19, %v212_v2  ;;  %v221_v26 = vmul.f32 %v220_v24, %v212_v2 }
 0x15b   :  { %v233_v22 = vadd.f32 1.0, %v232_v21  ;;  %v222_v30 = vadd.f32 1.1283791, %v221_v26 }
 0x15d   :  { %456 = vrcp.f32 %v233_v22  ;;  %v245_v29 = vand.u32 2147483648, %v233_v22  ;;  %v243_v32 = vand.u32 2147483647, %v233_v22  ;;  %vm239_vm6 = vweird.f32 %v233_v22 }
 0x15e   :  { %v223_v35 = vmul.f32 %v222_v30, %v210_v63 }
 0x15f   :  { %v246_v34 = vor.u32 1.1754944e-38, %v245_v29  ;;  %vm244_vm8 = vcmp.eq.f32.partialorder %v243_v32, 8.507059e+37 }
 0x163   :  { %v457_v25 = vpop.eup %456 }
 0x164   :  { %v235_v27 = vmul.f32 %v457_v25, %v233_v22  ;;  %vm240_vm5 = vweird.f32 %v457_v25 }
 0x165   :  { %vm241_vm7 = vmor %vm239_vm6, %vm240_vm5 }
 0x166   :  { %v236_v28 = vsub.f32 1.0, %v235_v27 }
 0x168   :  { %v237_v31 = vmul.f32 %v457_v25, %v236_v28 }
 0x16a   :  { %v238_v33 = vadd.f32 %v457_v25, %v237_v31 }
 0x16c   :  { %v242_v36 = vsel %vm241_vm7, %v457_v25, %v238_v33 }
 0x16d   :  { %v247_v37 = vsel %vm244_vm8, %v246_v34, %v242_v36 }
 0x16e   :  { %v248_v38 = vmul.f32 %v247_v37, %v223_v35 }
 0x170   :  { %v396_v39 = vclamps-f32 %v248_v38, 1.0 }
 0x172   :  { %v251_v41 = vadd.f32 1.0, %v396_v39 }
 0x174   :  { %v252_v42 = vmul.f32 %v251_v41, %v209_v40 }
 0x176   :  { %v253_v43 = vpack.c.bf16 %v252_v42, %v252_v42 }
 0x178   :  { %330 = vmatmul.bf16.vlgmr.msra.gmra.mxu2 %v253_v43 }
 0x1fb   :  { %v331_v45 = vpop.f32.mrf.mxu2 }
 0x1fc   :  { %v332_v46 = vadd.f32 %v453_v44, %v331_v45 }
 0x1fe   :  { %336 = vst.msk [vmem:[#allocation5] sm:$0xff] %vm335_vm9, %v332_v46 }
 0x1ff   :  { %347 = dma.vmem_to_hbm [thread:$0]  %s343_s18, 128, %s345_s20, [#allocation4]  }
 0x203   :  { %v333_v47 = vpop.f32.mrf.mxu2 }
 0x204   :  { %508 = dma.done.wait [#allocation4], 128  }
 0x205   :  { %509 = vsyncadd [#allocation4], 4294967168 }
 0x206   :  { %352 = vsyncpa [#allocation3], 1 }
 0x207   :  { %353 = vsyncpa [#allocation4], 1 }

// kernel: tpu_custom_call.1
= control target key start
LH: loop header
LB: loop body
LE: loop exit
PB: predicated region body
PF: predicated region fallthrough
CT: control target
= control target key end

     0   :  { %12 = vsyncpa [#allocation3], 0  ;;  %s620_s0 = inlined_call_operand.vmem [shape: f32[8,32], index: 0, kind: input, shape index: {}]   ;;  %s621_s1 = inlined_call_operand.hbm [shape: bf16[32,128], index: 1, kind: input, shape index: {}]   ;;  %s622_s2 = inlined_call_operand.vmem [shape: f32[1,128], index: 2, kind: input, shape index: {}]   ;;  %s623_s3 = inlined_call_operand.vmem [shape: bf16[128,128], index: 3, kind: input, shape index: {}]   ;;  %s624_s4 = inlined_call_operand.vmem [shape: f32[1,128], index: 4, kind: input, shape index: {}]   ;;  %s625_s5 = inlined_call_operand.vmem [shape: bf16[128,16], index: 5, kind: input, shape index: {}]   ;;  %s626_s6 = inlined_call_operand.vmem [shape: f32[1,16], index: 6, kind: input, shape index: {}]   ;;  %s627_s7 = inlined_call_operand.hbm [shape: f32[8,16], index: 7, kind: output, shape index: {}]  }
   0x1   :  { %13 = vsyncpa [#allocation4], 0  ;;  %s20_s26 = sshll.u32 %s621_s1, 4  ;;  %s510_s27 = smov [#allocation2]   ;;  %s21_s26 = int_to_ptr.hbm [resolvable:$true] %s20_s26 }
   0x2   :  { %s22_s28 = sshll.u32 %s510_s27, 4  ;;  %s511_s29 = smov 64   ;;  %s23_s28 = int_to_ptr.vmem [resolvable:$true] %s22_s28 }
   0x3   :  { %s512_s30 = smov 4  }
   0x4   :  { %28 = dma.hbm_to_vmem [thread:$0]  %s21_s26, 256, %s23_s28, [#allocation3], %s511_s29, %s511_s29, %s512_s30  }
   0x5   :  { %506 = dma.done.wait [#allocation3], 256  }
   0x6   :  { %507 = vsyncadd [#allocation3], 4294967040  ;;  %v430_v0 = vld [vmem:[#allocation2 + $0x8] sm:$0xff]  ;;  %v429_v1 = vld [vmem:[#allocation2] sm:$0xff]  ;;  %vm66_vm0 = vcmask 261120   ;;  %s513_s17 = smov [#allocation5]  }
   0x7   :  { %76 = vmatpush.bf16.msra.mxu0 %v430_v0  ;;  %v44_v2 = vld [vmem:[%s620_s0] sm:$0xff]  ;;  %v438_v4 = vld [vmem:[%s623_s3 + $0x38] sm:$0xff]  ;;  %v437_v5 = vld [vmem:[%s623_s3 + $0x30] sm:$0xff]  ;;  %s342_s18 = sshll.u32 %s513_s17, 4  ;;  %s344_s20 = sshll.u32 %s627_s7, 4  ;;  %vm335_vm9 = vcmask 130048   ;;  %s343_s18 = int_to_ptr.vmem [resolvable:$true] %s342_s18  ;;  %s345_s20 = int_to_ptr.hbm [resolvable:$true] %s344_s20 }
   0x8   :  { %v45_v3 = vpack.c.bf16 %v44_v2, %v44_v2  ;;  %196 = vmatpush.bf16.msra.mxu1 %v438_v4  ;;  %v451_v6 = vld [vmem:[%s622_s2] ss:$0 sm:$0xff]  ;;  %v436_v7 = vld [vmem:[%s623_s3 + $0x28] sm:$0xff]  ;;  %v434_v13 = vld [vmem:[%s623_s3 + $0x18] sm:$0xff] }
   0x9   :  { %v435_v10 = vld [vmem:[%s623_s3 + $0x20] sm:$0xff]  ;;  %v433_v17 = vld [vmem:[%s623_s3 + $0x10] sm:$0xff]  ;;  %v432_v22 = vld [vmem:[%s623_s3 + $0x8] sm:$0xff] }
   0xa   :  { %v431_v26 = vld [vmem:[%s623_s3] sm:$0xff]  ;;  %v446_v56 = vld [vmem:[%s625_s5 + $0x38] sm:$0xff]  ;;  %v445_v57 = vld [vmem:[%s625_s5 + $0x30] sm:$0xff] }
   0xb   :  { %77 = vmatpush.bf16.msra.mxu0 %v429_v1  ;;  %322 = vmatpush.bf16.msra.mxu2 %v446_v56  ;;  %v452_v58 = vld [vmem:[%s624_s4] ss:$0 sm:$0xff]  ;;  %v444_v59 = vld [vmem:[%s625_s5 + $0x28] sm:$0xff]  ;;  %v442_v1 = vld [vmem:[%s625_s5 + $0x18] sm:$0xff] }
   0xc   :  { %197 = vmatpush.bf16.msra.mxu1 %v437_v5  ;;  %v443_v62 = vld [vmem:[%s625_s5 + $0x20] sm:$0xff] }
   0xe   :  { %362 = vmatmul.msk.bf16.vlgmr.msra.gmra.mxu0 %vm66_vm0, %v45_v3 }
   0xf   :  { %323 = vmatpush.bf16.msra.mxu2 %v445_v57 }
  0x10   :  { %198 = vmatpush.bf16.msra.mxu1 %v436_v7 }
  0x13   :  { %324 = vmatpush.bf16.msra.mxu2 %v444_v59 }
  0x14   :  { %199 = vmatpush.bf16.msra.mxu1 %v435_v10 }
  0x17   :  { %325 = vmatpush.bf16.msra.mxu2 %v443_v62 }
  0x18   :  { %200 = vmatpush.bf16.msra.mxu1 %v434_v13 }
  0x1b   :  { %326 = vmatpush.bf16.msra.mxu2 %v442_v1 }
  0x1c   :  { %201 = vmatpush.bf16.msra.mxu1 %v433_v17 }
  0x20   :  { %202 = vmatpush.bf16.msra.mxu1 %v432_v22 }
  0x24   :  { %203 = vmatpush.bf16.msra.mxu1 %v431_v26 }
  0x8b   :  { %v79_v8 = vpop.f32.mrf.mxu0 }
  0x8c   :  { %v80_v9 = vadd.f32 %v451_v6, %v79_v8  ;;  %v441_v6 = vld [vmem:[%s625_s5 + $0x10] sm:$0xff] }
  0x8d   :  { %327 = vmatpush.bf16.msra.mxu2 %v441_v6 }
  0x8e   :  { %v84_v11 = vmul.f32 0.70710677, %v80_v9  ;;  %v83_v52 = vmul.f32 0.5, %v80_v9 }
  0x90   :  { %v85_v12 = vmul.f32 %v84_v11, %v84_v11 }
  0x92   :  { %v86_v14 = vmin.f32 %v85_v12, 16.0 }
  0x93   :  { %v81_v15 = vpop.f32.mrf.mxu0 }
  0x94   :  { %v87_v16 = vmul.f32 2.1237322e-06, %v86_v14  ;;  %v98_v18 = vmul.f32 3.8918573e-05, %v86_v14  ;;  %v439_v15 = vld [vmem:[%s625_s5] sm:$0xff] }
  0x96   :  { %v88_v19 = vadd.f32 0.00028619796, %v87_v16  ;;  %v99_v20 = vadd.f32 0.001143296, %v98_v18 }
  0x98   :  { %v89_v21 = vmul.f32 %v88_v19, %v86_v14  ;;  %v100_v23 = vmul.f32 %v99_v20, %v86_v14 }
  0x9a   :  { %v101_v24 = vadd.f32 0.014752088, %v100_v23  ;;  %v90_v25 = vadd.f32 0.0036580483, %v89_v21 }
  0x9c   :  { %v102_v27 = vmul.f32 %v101_v24, %v86_v14  ;;  %v91_v29 = vmul.f32 %v90_v25, %v86_v14 }
  0x9e   :  { %v103_v28 = vadd.f32 0.112945676, %v102_v27  ;;  %v92_v32 = vadd.f32 0.05243302, %v91_v29 }
  0xa0   :  { %v104_v30 = vmul.f32 %v103_v28, %v86_v14  ;;  %v93_v35 = vmul.f32 %v92_v32, %v86_v14 }
  0xa2   :  { %v105_v31 = vadd.f32 0.4994258, %v104_v30  ;;  %v94_v36 = vadd.f32 0.18741608, %v93_v35 }
  0xa4   :  { %v106_v33 = vmul.f32 %v105_v31, %v86_v14  ;;  %v95_v38 = vmul.f32 %v94_v36, %v86_v14 }
  0xa6   :  { %v107_v34 = vadd.f32 1.0, %v106_v33  ;;  %v96_v42 = vadd.f32 1.1283791, %v95_v38 }
  0xa8   :  { %454 = vrcp.f32 %v107_v34  ;;  %v119_v41 = vand.u32 2147483648, %v107_v34  ;;  %v117_v44 = vand.u32 2147483647, %v107_v34  ;;  %vm113_vm2 = vweird.f32 %v107_v34 }
  0xa9   :  { %v97_v47 = vmul.f32 %v96_v42, %v84_v11  ;;  %v440_v11 = vld [vmem:[%s625_s5 + $0x8] sm:$0xff] }
  0xaa   :  { %v120_v46 = vor.u32 1.1754944e-38, %v119_v41  ;;  %vm118_vm4 = vcmp.eq.f32.partialorder %v117_v44, 8.507059e+37  ;;  %328 = vmatpush.bf16.msra.mxu2 %v440_v11  ;;  %v453_v44 = vld [vmem:[%s626_s6] ss:$0 sm:$0xff] }
  0xae   :  { %v455_v37 = vpop.eup %454  ;;  %329 = vmatpush.bf16.msra.mxu2 %v439_v15 }
  0xaf   :  { %v109_v39 = vmul.f32 %v455_v37, %v107_v34  ;;  %vm114_vm1 = vweird.f32 %v455_v37 }
  0xb0   :  { %vm115_vm3 = vmor %vm113_vm2, %vm114_vm1 }
  0xb1   :  { %v110_v40 = vsub.f32 1.0, %v109_v39 }
  0xb3   :  { %v111_v43 = vmul.f32 %v455_v37, %v110_v40 }
  0xb5   :  { %v112_v45 = vadd.f32 %v455_v37, %v111_v43 }
  0xb7   :  { %v116_v48 = vsel %vm115_vm3, %v455_v37, %v112_v45 }
  0xb8   :  { %v121_v49 = vsel %vm118_vm4, %v120_v46, %v116_v48 }
  0xb9   :  { %v122_v50 = vmul.f32 %v121_v49, %v97_v47 }
  0xbb   :  { %v363_v51 = vclamps-f32 %v122_v50, 1.0 }
  0xbd   :  { %v125_v53 = vadd.f32 1.0, %v363_v51 }
  0xbf   :  { %v126_v54 = vmul.f32 %v125_v53, %v83_v52 }
  0xc1   :  { %v127_v55 = vpack.c.bf16 %v126_v54, %v126_v54 }
  0xc3   :  { %204 = vmatmul.bf16.vlgmr.msra.gmra.mxu1 %v127_v55 }
 0x140   :  { %v205_v60 = vpop.f32.mrf.mxu1 }
 0x141   :  { %v206_v61 = vadd.f32 %v452_v58, %v205_v60 }
 0x143   :  { %v210_v63 = vmul.f32 0.70710677, %v206_v61  ;;  %v209_v40 = vmul.f32 0.5, %v206_v61 }
 0x145   :  { %v211_v0 = vmul.f32 %v210_v63, %v210_v63 }
 0x147   :  { %v212_v2 = vmin.f32 %v211_v0, 16.0 }
 0x148   :  { %v207_v3 = vpop.f32.mrf.mxu1 }
 0x149   :  { %v213_v4 = vmul.f32 2.1237322e-06, %v212_v2  ;;  %v224_v5 = vmul.f32 3.8918573e-05, %v212_v2 }
 0x14b   :  { %v214_v7 = vadd.f32 0.00028619796, %v213_v4  ;;  %v225_v8 = vadd.f32 0.001143296, %v224_v5 }
 0x14d   :  { %v215_v9 = vmul.f32 %v214_v7, %v212_v2  ;;  %v226_v10 = vmul.f32 %v225_v8, %v212_v2 }
 0x14f   :  { %v227_v12 = vadd.f32 0.014752088, %v226_v10  ;;  %v216_v13 = vadd.f32 0.0036580483, %v215_v9 }
 0x151   :  { %v228_v14 = vmul.f32 %v227_v12, %v212_v2  ;;  %v217_v17 = vmul.f32 %v216_v13, %v212_v2 }
 0x153   :  { %v229_v16 = vadd.f32 0.112945676, %v228_v14  ;;  %v218_v20 = vadd.f32 0.05243302, %v217_v17 }
 0x155   :  { %v230_v18 = vmul.f32 %v229_v16, %v212_v2  ;;  %v219_v23 = vmul.f32 %v218_v20, %v212_v2 }
 0x157   :  { %v231_v19 = vadd.f32 0.4994258, %v230_v18  ;;  %v220_v24 = vadd.f32 0.18741608, %v219_v23 }
 0x159   :  { %v232_v21 = vmul.f32 %v231_v19, %v212_v2  ;;  %v221_v26 = vmul.f32 %v220_v24, %v212_v2 }
 0x15b   :  { %v233_v22 = vadd.f32 1.0, %v232_v21  ;;  %v222_v30 = vadd.f32 1.1283791, %v221_v26 }
 0x15d   :  { %456 = vrcp.f32 %v233_v22  ;;  %v245_v29 = vand.u32 2147483648, %v233_v22  ;;  %v243_v32 = vand.u32 2147483647, %v233_v22  ;;  %vm239_vm6 = vweird.f32 %v233_v22 }
 0x15e   :  { %v223_v35 = vmul.f32 %v222_v30, %v210_v63 }
 0x15f   :  { %v246_v34 = vor.u32 1.1754944e-38, %v245_v29  ;;  %vm244_vm8 = vcmp.eq.f32.partialorder %v243_v32, 8.507059e+37 }
 0x163   :  { %v457_v25 = vpop.eup %456 }
 0x164   :  { %v235_v27 = vmul.f32 %v457_v25, %v233_v22  ;;  %vm240_vm5 = vweird.f32 %v457_v25 }
 0x165   :  { %vm241_vm7 = vmor %vm239_vm6, %vm240_vm5 }
 0x166   :  { %v236_v28 = vsub.f32 1.0, %v235_v27 }
 0x168   :  { %v237_v31 = vmul.f32 %v457_v25, %v236_v28 }
 0x16a   :  { %v238_v33 = vadd.f32 %v457_v25, %v237_v31 }
 0x16c   :  { %v242_v36 = vsel %vm241_vm7, %v457_v25, %v238_v33 }
 0x16d   :  { %v247_v37 = vsel %vm244_vm8, %v246_v34, %v242_v36 }
 0x16e   :  { %v248_v38 = vmul.f32 %v247_v37, %v223_v35 }
 0x170   :  { %v396_v39 = vclamps-f32 %v248_v38, 1.0 }
 0x172   :  { %v251_v41 = vadd.f32 1.0, %v396_v39 }
 0x174   :  { %v252_v42 = vmul.f32 %v251_v41, %v209_v40 }
 0x176   :  { %v253_v43 = vpack.c.bf16 %v252_v42, %v252_v42 }
 0x178   :  { %330 = vmatmul.bf16.vlgmr.msra.gmra.mxu2 %v253_v43 }
 0x1fb   :  { %v331_v45 = vpop.f32.mrf.mxu2 }
 0x1fc   :  { %v332_v46 = vadd.f32 %v453_v44, %v331_v45 }
 0x1fe   :  { %336 = vst.msk [vmem:[#allocation5] sm:$0xff] %vm335_vm9, %v332_v46 }
 0x1ff   :  { %347 = dma.vmem_to_hbm [thread:$0]  %s343_s18, 128, %s345_s20, [#allocation4]  }
 0x203   :  { %v333_v47 = vpop.f32.mrf.mxu2 }
 0x204   :  { %508 = dma.done.wait [#allocation4], 128  }
 0x205   :  { %509 = vsyncadd [#allocation4], 4294967168 }
 0x206   :  { %352 = vsyncpa [#allocation3], 1 }
 0x207   :  { %353 = vsyncpa [#allocation4], 1 }

</bundles_post_ra>
